<compile_context>
chip_gen: v7x
topology: tpu7x:2x2x1
jax: 0.10.0
libtpu: 0.0.40
codegen_flags: <defaults>
</compile_context>

<pallas_src>
import functools

import jax
import jax.numpy as jnp
from jax.experimental import pallas as pl
from jax.experimental.pallas import tpu as pltpu


# ----------------------------- config (synthetic) -----------------------------
BATCH = 8
CONTINUOUS_DIM = 4
CATEGORIES = (3, 5, 2)
INPUT_DIMS = CONTINUOUS_DIM + sum(CATEGORIES)      # 14
NDIMS = 32
EMB = 16                                           # time_embedding_size
LAYERS = 2
LN_EPS = 1e-5
LEAKY_SLOPE = 0.01                                 # nn.LeakyReLU default
OUT_LANES = 128                                    # lane-dense (zero-padded) output width


def _round_up(x, m):
    return (x + m - 1) // m * m


# --------------------------------- kernel -------------------------------------
def _silu(v):
    return v * jax.nn.sigmoid(v)


def _leaky_relu(v):
    return jnp.where(v >= 0, v, LEAKY_SLOPE * v)


def _layernorm(v, g, b):
    mu = jnp.mean(v, axis=-1, keepdims=True)
    var = jnp.mean((v - mu) ** 2, axis=-1, keepdims=True)
    return (v - mu) * jax.lax.rsqrt(var + LN_EPS) * g + b


def tab_resnet_kernel(
    # batch-tiled data
    x_ref,        # (TILE_B, INPUT_DIMS)
    tfe_ref,      # (TILE_B, EMB)  Gaussian-Fourier features of t
    # time_embed MLP
    te_w1, te_b1, te_w2, te_b2,
    # input projection
    proj_w, proj_b,
    # fused time-injection weights (all layers in one matmul)
    tw_all,       # (EMB, LAYERS*NDIMS)
    tb_all,       # (1,   LAYERS*NDIMS)
    # stacked residual-block params (leading dim = LAYERS)
    ln1_g, ln1_b, l1_w, l1_b, ln2_g, ln2_b, l2_w, l2_b,
    # final head (zero-padded to OUT_LANES columns)
    fh_g, fh_beta, fh_w, fh_b,
    # output
    out_ref,      # (TILE_B, OUT_LANES)
    *, num_layers, ndims,
):
    f32 = jnp.float32
    # NOTE(perf): for v6e/v7x production, cast dot operands to bf16 here
    # (keep preferred_element_type=f32); kept f32 to match PyTorch numerics.

    # ---- time embedding MLP: Linear -> SiLU -> Linear -> SiLU ----
    emb = _silu(jnp.dot(tfe_ref[...], te_w1[...], preferred_element_type=f32) + te_b1[...])
    emb = _silu(jnp.dot(emb, te_w2[...], preferred_element_type=f32) + te_b2[...])

    # ---- hoisted SiLU(emb) + all layers' time injections in ONE matmul ----
    emb_s = _silu(emb)                                                 # hoisted (once)
    tinj = jnp.dot(emb_s, tw_all[...], preferred_element_type=f32) + tb_all[...]

    # ---- input projection ----
    h = jnp.dot(x_ref[...], proj_w[...], preferred_element_type=f32) + proj_b[...]

    # ---- residual blocks (statically unrolled) ----
    for l in range(num_layers):
        r = _silu(_layernorm(h, ln1_g[l], ln1_b[l]))
        r = jnp.dot(r, l1_w[l], preferred_element_type=f32) + l1_b[l]
        # time-embedding injection (precomputed, static lane slice)
        r = r + tinj[:, l * ndims:(l + 1) * ndims]
        r = _silu(_layernorm(r, ln2_g[l], ln2_b[l]))
        # dropout: eval mode -> identity
        r = jnp.dot(r, l2_w[l], preferred_element_type=f32) + l2_b[l]
        h = h + r

    # ---- final head: LayerNorm -> LeakyReLU -> Linear (lane-dense padded store) ----
    o = _leaky_relu(_layernorm(h, fh_g[...], fh_beta[...]))
    out_ref[...] = jnp.dot(o, fh_w[...], preferred_element_type=f32) + fh_b[...]


# ------------------------------- wrapper ---------------------------------------
def make_params(key):
    ks = jax.random.split(key, 32)
    i = iter(range(32))

    def nrm(k, shape, scale=0.05):
        return jax.random.normal(k, shape, dtype=jnp.float32) * scale

    p = {}
    # GaussianFourierProjection fixed weights (embedding_size // 2,)
    p["fourier_w"] = jax.random.normal(ks[next(i)], (EMB // 2,), dtype=jnp.float32)
    # time_embed MLP
    p["te_w1"] = nrm(ks[next(i)], (EMB, EMB)); p["te_b1"] = jnp.zeros((1, EMB), jnp.float32)
    p["te_w2"] = nrm(ks[next(i)], (EMB, EMB)); p["te_b2"] = jnp.zeros((1, EMB), jnp.float32)
    # proj
    p["proj_w"] = nrm(ks[next(i)], (INPUT_DIMS, NDIMS))
    p["proj_b"] = jnp.zeros((1, NDIMS), jnp.float32)
    # residual blocks (stacked over LAYERS)
    p["ln1_g"] = jnp.ones((LAYERS, 1, NDIMS), jnp.float32)
    p["ln1_b"] = jnp.zeros((LAYERS, 1, NDIMS), jnp.float32)
    p["l1_w"] = nrm(ks[next(i)], (LAYERS, NDIMS, NDIMS))
    p["l1_b"] = jnp.zeros((LAYERS, 1, NDIMS), jnp.float32)
    p["tw"] = nrm(ks[next(i)], (LAYERS, EMB, NDIMS))
    p["tb"] = jnp.zeros((LAYERS, 1, NDIMS), jnp.float32)
    p["ln2_g"] = jnp.ones((LAYERS, 1, NDIMS), jnp.float32)
    p["ln2_b"] = jnp.zeros((LAYERS, 1, NDIMS), jnp.float32)
    p["l2_w"] = nrm(ks[next(i)], (LAYERS, NDIMS, NDIMS))
    p["l2_b"] = jnp.zeros((LAYERS, 1, NDIMS), jnp.float32)
    # final head
    p["fh_g"] = jnp.ones((1, NDIMS), jnp.float32)
    p["fh_beta"] = jnp.zeros((1, NDIMS), jnp.float32)
    p["fh_w"] = nrm(ks[next(i)], (NDIMS, INPUT_DIMS))
    p["fh_b"] = jnp.zeros((1, INPUT_DIMS), jnp.float32)
    return p


def _pick_tile_b(b):
    # Amortize the ~0.35 us per-grid-step overhead with big tiles, but cap so
    # double-buffered (x + tfe + padded-out) blocks stay ~1 MiB, far under v7x's
    # 32 MiB scoped / 64 MiB physical VMEM.
    if b <= 1024:
        return _round_up(b, 8)
    return 1024


@jax.jit
def tab_resnet_forward(x, t, params):
    b = x.shape[0]
    tile_b = _pick_tile_b(b)
    b_pad = _round_up(b, tile_b)
    if b_pad != b:
        x = jnp.pad(x, ((0, b_pad - b), (0, 0)))
        t = jnp.pad(t, ((0, b_pad - b),))

    # Gaussian Fourier projection of t (tiny; fuses into this jit's XLA prologue).
    xp = t[:, None] * params["fourier_w"][None, :] * (2.0 * jnp.pi)
    tfe = jnp.concatenate([jnp.sin(xp), jnp.cos(xp)], axis=-1)          # (b_pad, EMB)

    # Stack all layers' time-injection weights -> one (EMB, LAYERS*NDIMS) matmul in-kernel.
    tw_all = jnp.transpose(params["tw"], (1, 0, 2)).reshape(EMB, LAYERS * NDIMS)
    tb_all = params["tb"].reshape(1, LAYERS * NDIMS)

    # Lane-dense output: zero-pad final Linear to OUT_LANES columns (unmasked vst).
    fh_w_pad = jnp.pad(params["fh_w"], ((0, 0), (0, OUT_LANES - INPUT_DIMS)))
    fh_b_pad = jnp.pad(params["fh_b"], ((0, 0), (0, OUT_LANES - INPUT_DIMS)))

    args = [
        x, tfe,
        params["te_w1"], params["te_b1"], params["te_w2"], params["te_b2"],
        params["proj_w"], params["proj_b"],
        tw_all, tb_all,
        params["ln1_g"], params["ln1_b"], params["l1_w"], params["l1_b"],
        params["ln2_g"], params["ln2_b"], params["l2_w"], params["l2_b"],
        params["fh_g"], params["fh_beta"], fh_w_pad, fh_b_pad,
    ]

    def const_spec(a):
        # Whole array, same block every grid step -> parameter stays VMEM-resident.
        nd = a.ndim
        return pl.BlockSpec(a.shape, lambda i, _nd=nd: (0,) * _nd)

    in_specs = [
        pl.BlockSpec((tile_b, INPUT_DIMS), lambda i: (i, 0)),   # x : tiled over batch
        pl.BlockSpec((tile_b, EMB), lambda i: (i, 0)),          # tfe: tiled over batch
    ] + [const_spec(a) for a in args[2:]]

    out = pl.pallas_call(
        functools.partial(tab_resnet_kernel, num_layers=LAYERS, ndims=NDIMS),
        grid=(b_pad // tile_b,),
        out_shape=jax.ShapeDtypeStruct((b_pad, OUT_LANES), jnp.float32),
        in_specs=in_specs,
        out_specs=pl.BlockSpec((tile_b, OUT_LANES), lambda i: (i, 0)),
        compiler_params=pltpu.CompilerParams(
            dimension_semantics=("parallel",),   # shards batch tiles across v7x's 2 TCs
        ),
    )(*args)
    return out[:b, :INPUT_DIMS]


# ------------------------------ pure-JAX reference ------------------------------
def tab_resnet_ref(x, t, p):
    xp = t[:, None] * p["fourier_w"][None, :] * (2.0 * jnp.pi)
    tfe = jnp.concatenate([jnp.sin(xp), jnp.cos(xp)], axis=-1)

    def silu(v): return v * jax.nn.sigmoid(v)

    def ln(v, g, b):
        mu = jnp.mean(v, -1, keepdims=True)
        var = jnp.mean((v - mu) ** 2, -1, keepdims=True)
        return (v - mu) / jnp.sqrt(var + LN_EPS) * g + b

    emb = silu(tfe @ p["te_w1"] + p["te_b1"])
    emb = silu(emb @ p["te_w2"] + p["te_b2"])
    h = x @ p["proj_w"] + p["proj_b"]
    for l in range(LAYERS):
        r = silu(ln(h, p["ln1_g"][l], p["ln1_b"][l])) @ p["l1_w"][l] + p["l1_b"][l]
        r = r + silu(emb) @ p["tw"][l] + p["tb"][l]
        r = silu(ln(r, p["ln2_g"][l], p["ln2_b"][l])) @ p["l2_w"][l] + p["l2_b"][l]
        h = h + r
    o = ln(h, p["fh_g"], p["fh_beta"])
    o = jnp.where(o >= 0, o, LEAKY_SLOPE * o)
    return o @ p["fh_w"] + p["fh_b"]


# ----------------------------------- main ---------------------------------------
if __name__ == "__main__":
    key = jax.random.PRNGKey(0)
    k_p, k_x, k_t = jax.random.split(key, 3)

    params = make_params(k_p)
    x = jax.random.normal(k_x, (BATCH, INPUT_DIMS), dtype=jnp.float32)
    t = jax.random.uniform(k_t, (BATCH,), dtype=jnp.float32)

    out = tab_resnet_forward(x, t, params)
    out = jax.block_until_ready(out)

    ref = tab_resnet_ref(x, t, params)
    assert out.shape == (BATCH, INPUT_DIMS)
    assert jnp.allclose(out, ref, atol=1e-4, rtol=1e-4), "mismatch vs reference"

    print("KERNEL_OK")
</pallas_src>

<mosaic_0001>
module attributes {stable_mosaic.version = 11 : i64} {
  func.func @tab_resnet_kernel(%arg0: i32, %arg1: memref<8x14xf32, #tpu.memory_space<vmem>>, %arg2: memref<8x16xf32, #tpu.memory_space<vmem>>, %arg3: memref<16x16xf32, #tpu.memory_space<vmem>>, %arg4: memref<1x16xf32, #tpu.memory_space<vmem>>, %arg5: memref<16x16xf32, #tpu.memory_space<vmem>>, %arg6: memref<1x16xf32, #tpu.memory_space<vmem>>, %arg7: memref<14x32xf32, #tpu.memory_space<vmem>>, %arg8: memref<1x32xf32, #tpu.memory_space<vmem>>, %arg9: memref<16x64xf32, #tpu.memory_space<vmem>>, %arg10: memref<1x64xf32, #tpu.memory_space<vmem>>, %arg11: memref<2x1x32xf32, #tpu.memory_space<vmem>>, %arg12: memref<2x1x32xf32, #tpu.memory_space<vmem>>, %arg13: memref<2x32x32xf32, #tpu.memory_space<vmem>>, %arg14: memref<2x1x32xf32, #tpu.memory_space<vmem>>, %arg15: memref<2x1x32xf32, #tpu.memory_space<vmem>>, %arg16: memref<2x1x32xf32, #tpu.memory_space<vmem>>, %arg17: memref<2x32x32xf32, #tpu.memory_space<vmem>>, %arg18: memref<2x1x32xf32, #tpu.memory_space<vmem>>, %arg19: memref<1x32xf32, #tpu.memory_space<vmem>>, %arg20: memref<1x32xf32, #tpu.memory_space<vmem>>, %arg21: memref<32x128xf32, #tpu.memory_space<vmem>>, %arg22: memref<1x128xf32, #tpu.memory_space<vmem>>, %arg23: memref<8x128xf32, #tpu.memory_space<vmem>>) attributes {dimension_semantics = [#tpu.dimension_semantics<parallel>], iteration_bounds = array<i64: 1>, scalar_prefetch = 0 : i64, scratch_operands = 0 : i64, tpu.core_type = #tpu.core_type<tc>, window_params = [{transform_indices = @transform_0, window_bounds = array<i64: 8, 14>}, {transform_indices = @transform_1, window_bounds = array<i64: 8, 16>}, {pipeline_mode = #tpu.pipeline_mode<synchronous>, transform_indices = @transform_2, window_bounds = array<i64: 16, 16>}, {pipeline_mode = #tpu.pipeline_mode<synchronous>, transform_indices = @transform_3, window_bounds = array<i64: 1, 16>}, {pipeline_mode = #tpu.pipeline_mode<synchronous>, transform_indices = @transform_4, window_bounds = array<i64: 16, 16>}, {pipeline_mode = #tpu.pipeline_mode<synchronous>, transform_indices = @transform_5, window_bounds = array<i64: 1, 16>}, {pipeline_mode = #tpu.pipeline_mode<synchronous>, transform_indices = @transform_6, window_bounds = array<i64: 14, 32>}, {pipeline_mode = #tpu.pipeline_mode<synchronous>, transform_indices = @transform_7, window_bounds = array<i64: 1, 32>}, {pipeline_mode = #tpu.pipeline_mode<synchronous>, transform_indices = @transform_8, window_bounds = array<i64: 16, 64>}, {pipeline_mode = #tpu.pipeline_mode<synchronous>, transform_indices = @transform_9, window_bounds = array<i64: 1, 64>}, {pipeline_mode = #tpu.pipeline_mode<synchronous>, transform_indices = @transform_10, window_bounds = array<i64: 2, 1, 32>}, {pipeline_mode = #tpu.pipeline_mode<synchronous>, transform_indices = @transform_11, window_bounds = array<i64: 2, 1, 32>}, {pipeline_mode = #tpu.pipeline_mode<synchronous>, transform_indices = @transform_12, window_bounds = array<i64: 2, 32, 32>}, {pipeline_mode = #tpu.pipeline_mode<synchronous>, transform_indices = @transform_13, window_bounds = array<i64: 2, 1, 32>}, {pipeline_mode = #tpu.pipeline_mode<synchronous>, transform_indices = @transform_14, window_bounds = array<i64: 2, 1, 32>}, {pipeline_mode = #tpu.pipeline_mode<synchronous>, transform_indices = @transform_15, window_bounds = array<i64: 2, 1, 32>}, {pipeline_mode = #tpu.pipeline_mode<synchronous>, transform_indices = @transform_16, window_bounds = array<i64: 2, 32, 32>}, {pipeline_mode = #tpu.pipeline_mode<synchronous>, transform_indices = @transform_17, window_bounds = array<i64: 2, 1, 32>}, {pipeline_mode = #tpu.pipeline_mode<synchronous>, transform_indices = @transform_18, window_bounds = array<i64: 1, 32>}, {pipeline_mode = #tpu.pipeline_mode<synchronous>, transform_indices = @transform_19, window_bounds = array<i64: 1, 32>}, {pipeline_mode = #tpu.pipeline_mode<synchronous>, transform_indices = @transform_20, window_bounds = array<i64: 32, 128>}, {pipeline_mode = #tpu.pipeline_mode<synchronous>, transform_indices = @transform_21, window_bounds = array<i64: 1, 128>}, {transform_indices = @transform_22, window_bounds = array<i64: 8, 128>}]} {
    %c0 = arith.constant 0 : index
    %c0_0 = arith.constant 0 : index
    %0 = vector.load %arg2[%c0, %c0_0] : memref<8x16xf32, #tpu.memory_space<vmem>>, vector<8x16xf32>
    %c0_1 = arith.constant 0 : index
    %c0_2 = arith.constant 0 : index
    %1 = vector.load %arg3[%c0_1, %c0_2] : memref<16x16xf32, #tpu.memory_space<vmem>>, vector<16x16xf32>
    %cst = arith.constant dense<0.000000e+00> : vector<8x16xf32>
    %2 = tpu.matmul %0, %1, %cst {dimension_numbers = #tpu.dot_dimension_numbers<[1], [0], [0], [1], [0, 0, 1, 1], [], []>} : vector<8x16xf32>, vector<16x16xf32>, vector<8x16xf32> -> vector<8x16xf32>
    %c0_3 = arith.constant 0 : index
    %c0_4 = arith.constant 0 : index
    %3 = vector.load %arg4[%c0_3, %c0_4] : memref<1x16xf32, #tpu.memory_space<vmem>>, vector<1x16xf32>
    %4 = vector.broadcast %3 : vector<1x16xf32> to vector<8x16xf32>
    %5 = arith.addf %2, %4 : vector<8x16xf32>
    %6 = arith.negf %5 : vector<8x16xf32>
    %7 = math.exp %6 : vector<8x16xf32>
    %cst_5 = arith.constant 1.000000e+00 : f32
    %8 = vector.broadcast %cst_5 : f32 to vector<8x16xf32>
    %9 = arith.addf %8, %7 : vector<8x16xf32>
    %10 = arith.divf %8, %9 : vector<8x16xf32>
    %11 = arith.mulf %5, %10 : vector<8x16xf32>
    %c0_6 = arith.constant 0 : index
    %c0_7 = arith.constant 0 : index
    %12 = vector.load %arg5[%c0_6, %c0_7] : memref<16x16xf32, #tpu.memory_space<vmem>>, vector<16x16xf32>
    %cst_8 = arith.constant dense<0.000000e+00> : vector<8x16xf32>
    %13 = tpu.matmul %11, %12, %cst_8 {dimension_numbers = #tpu.dot_dimension_numbers<[1], [0], [0], [1], [0, 0, 1, 1], [], []>} : vector<8x16xf32>, vector<16x16xf32>, vector<8x16xf32> -> vector<8x16xf32>
    %c0_9 = arith.constant 0 : index
    %c0_10 = arith.constant 0 : index
    %14 = vector.load %arg6[%c0_9, %c0_10] : memref<1x16xf32, #tpu.memory_space<vmem>>, vector<1x16xf32>
    %15 = vector.broadcast %14 : vector<1x16xf32> to vector<8x16xf32>
    %16 = arith.addf %13, %15 : vector<8x16xf32>
    %17 = arith.negf %16 : vector<8x16xf32>
    %18 = math.exp %17 : vector<8x16xf32>
    %cst_11 = arith.constant 1.000000e+00 : f32
    %19 = vector.broadcast %cst_11 : f32 to vector<8x16xf32>
    %20 = arith.addf %19, %18 : vector<8x16xf32>
    %21 = arith.divf %19, %20 : vector<8x16xf32>
    %22 = arith.mulf %16, %21 : vector<8x16xf32>
    %23 = arith.negf %22 : vector<8x16xf32>
    %24 = math.exp %23 : vector<8x16xf32>
    %cst_12 = arith.constant 1.000000e+00 : f32
    %25 = vector.broadcast %cst_12 : f32 to vector<8x16xf32>
    %26 = arith.addf %25, %24 : vector<8x16xf32>
    %27 = arith.divf %25, %26 : vector<8x16xf32>
    %28 = arith.mulf %22, %27 : vector<8x16xf32>
    %c0_13 = arith.constant 0 : index
    %c0_14 = arith.constant 0 : index
    %29 = vector.load %arg9[%c0_13, %c0_14] : memref<16x64xf32, #tpu.memory_space<vmem>>, vector<16x64xf32>
    %cst_15 = arith.constant dense<0.000000e+00> : vector<8x64xf32>
    %30 = tpu.matmul %28, %29, %cst_15 {dimension_numbers = #tpu.dot_dimension_numbers<[1], [0], [0], [1], [0, 0, 1, 1], [], []>} : vector<8x16xf32>, vector<16x64xf32>, vector<8x64xf32> -> vector<8x64xf32>
    %c0_16 = arith.constant 0 : index
    %c0_17 = arith.constant 0 : index
    %31 = vector.load %arg10[%c0_16, %c0_17] : memref<1x64xf32, #tpu.memory_space<vmem>>, vector<1x64xf32>
    %32 = vector.broadcast %31 : vector<1x64xf32> to vector<8x64xf32>
    %33 = arith.addf %30, %32 : vector<8x64xf32>
    %c0_18 = arith.constant 0 : index
    %c0_19 = arith.constant 0 : index
    %34 = vector.load %arg1[%c0_18, %c0_19] : memref<8x14xf32, #tpu.memory_space<vmem>>, vector<8x14xf32>
    %c0_20 = arith.constant 0 : index
    %c0_21 = arith.constant 0 : index
    %35 = vector.load %arg7[%c0_20, %c0_21] : memref<14x32xf32, #tpu.memory_space<vmem>>, vector<14x32xf32>
    %cst_22 = arith.constant dense<0.000000e+00> : vector<8x32xf32>
    %36 = tpu.matmul %34, %35, %cst_22 {dimension_numbers = #tpu.dot_dimension_numbers<[1], [0], [0], [1], [0, 0, 1, 1], [], []>} : vector<8x14xf32>, vector<14x32xf32>, vector<8x32xf32> -> vector<8x32xf32>
    %c0_23 = arith.constant 0 : index
    %c0_24 = arith.constant 0 : index
    %37 = vector.load %arg8[%c0_23, %c0_24] : memref<1x32xf32, #tpu.memory_space<vmem>>, vector<1x32xf32>
    %38 = vector.broadcast %37 : vector<1x32xf32> to vector<8x32xf32>
    %39 = arith.addf %36, %38 : vector<8x32xf32>
    %c0_25 = arith.constant 0 : index
    %c0_26 = arith.constant 0 : index
    %c0_27 = arith.constant 0 : index
    %40 = vector.load %arg11[%c0_25, %c0_26, %c0_27] : memref<2x1x32xf32, #tpu.memory_space<vmem>>, vector<1x1x32xf32>
    %41 = vector.shape_cast %40 : vector<1x1x32xf32> to vector<1x32xf32>
    %c0_28 = arith.constant 0 : index
    %c0_29 = arith.constant 0 : index
    %c0_30 = arith.constant 0 : index
    %42 = vector.load %arg12[%c0_28, %c0_29, %c0_30] : memref<2x1x32xf32, #tpu.memory_space<vmem>>, vector<1x1x32xf32>
    %43 = vector.shape_cast %42 : vector<1x1x32xf32> to vector<1x32xf32>
    %cst_31 = arith.constant dense<0.000000e+00> : vector<8xf32>
    %44 = vector.multi_reduction <add>, %39, %cst_31 [1] : vector<8x32xf32> to vector<8xf32>
    %45 = vector.shape_cast %44 : vector<8xf32> to vector<8x1xf32>
    %cst_32 = arith.constant 3.200000e+01 : f32
    %46 = vector.broadcast %cst_32 : f32 to vector<8x1xf32>
    %47 = arith.divf %45, %46 : vector<8x1xf32>
    %48 = vector.broadcast %47 : vector<8x1xf32> to vector<8x32xf32>
    %49 = arith.subf %39, %48 : vector<8x32xf32>
    %50 = arith.mulf %49, %49 : vector<8x32xf32>
    %cst_33 = arith.constant dense<0.000000e+00> : vector<8xf32>
    %51 = vector.multi_reduction <add>, %50, %cst_33 [1] : vector<8x32xf32> to vector<8xf32>
    %52 = vector.shape_cast %51 : vector<8xf32> to vector<8x1xf32>
    %cst_34 = arith.constant 3.200000e+01 : f32
    %53 = vector.broadcast %cst_34 : f32 to vector<8x1xf32>
    %54 = arith.divf %52, %53 : vector<8x1xf32>
    %55 = vector.broadcast %47 : vector<8x1xf32> to vector<8x32xf32>
    %56 = arith.subf %39, %55 : vector<8x32xf32>
    %cst_35 = arith.constant 9.99999974E-6 : f32
    %57 = vector.broadcast %cst_35 : f32 to vector<8x1xf32>
    %58 = arith.addf %54, %57 : vector<8x1xf32>
    %59 = math.rsqrt %58 : vector<8x1xf32>
    %60 = vector.broadcast %59 : vector<8x1xf32> to vector<8x32xf32>
    %61 = arith.mulf %56, %60 : vector<8x32xf32>
    %62 = vector.broadcast %41 : vector<1x32xf32> to vector<8x32xf32>
    %63 = arith.mulf %61, %62 : vector<8x32xf32>
    %64 = vector.broadcast %43 : vector<1x32xf32> to vector<8x32xf32>
    %65 = arith.addf %63, %64 : vector<8x32xf32>
    %66 = arith.negf %65 : vector<8x32xf32>
    %67 = math.exp %66 : vector<8x32xf32>
    %cst_36 = arith.constant 1.000000e+00 : f32
    %68 = vector.broadcast %cst_36 : f32 to vector<8x32xf32>
    %69 = arith.addf %68, %67 : vector<8x32xf32>
    %70 = arith.divf %68, %69 : vector<8x32xf32>
    %71 = arith.mulf %65, %70 : vector<8x32xf32>
    %c0_37 = arith.constant 0 : index
    %c0_38 = arith.constant 0 : index
    %c0_39 = arith.constant 0 : index
    %72 = vector.load %arg13[%c0_37, %c0_38, %c0_39] : memref<2x32x32xf32, #tpu.memory_space<vmem>>, vector<1x32x32xf32>
    %73 = vector.shape_cast %72 : vector<1x32x32xf32> to vector<32x32xf32>
    %cst_40 = arith.constant dense<0.000000e+00> : vector<8x32xf32>
    %74 = tpu.matmul %71, %73, %cst_40 {dimension_numbers = #tpu.dot_dimension_numbers<[1], [0], [0], [1], [0, 0, 1, 1], [], []>} : vector<8x32xf32>, vector<32x32xf32>, vector<8x32xf32> -> vector<8x32xf32>
    %c0_41 = arith.constant 0 : index
    %c0_42 = arith.constant 0 : index
    %c0_43 = arith.constant 0 : index
    %75 = vector.load %arg14[%c0_41, %c0_42, %c0_43] : memref<2x1x32xf32, #tpu.memory_space<vmem>>, vector<1x1x32xf32>
    %76 = vector.shape_cast %75 : vector<1x1x32xf32> to vector<1x32xf32>
    %77 = vector.broadcast %76 : vector<1x32xf32> to vector<8x32xf32>
    %78 = arith.addf %74, %77 : vector<8x32xf32>
    %79 = vector.extract_strided_slice %33 {offsets = [0, 0], sizes = [8, 32], strides = [1, 1]} : vector<8x64xf32> to vector<8x32xf32>
    %80 = arith.addf %78, %79 : vector<8x32xf32>
    %c0_44 = arith.constant 0 : index
    %c0_45 = arith.constant 0 : index
    %c0_46 = arith.constant 0 : index
    %81 = vector.load %arg15[%c0_44, %c0_45, %c0_46] : memref<2x1x32xf32, #tpu.memory_space<vmem>>, vector<1x1x32xf32>
    %82 = vector.shape_cast %81 : vector<1x1x32xf32> to vector<1x32xf32>
    %c0_47 = arith.constant 0 : index
    %c0_48 = arith.constant 0 : index
    %c0_49 = arith.constant 0 : index
    %83 = vector.load %arg16[%c0_47, %c0_48, %c0_49] : memref<2x1x32xf32, #tpu.memory_space<vmem>>, vector<1x1x32xf32>
    %84 = vector.shape_cast %83 : vector<1x1x32xf32> to vector<1x32xf32>
    %cst_50 = arith.constant dense<0.000000e+00> : vector<8xf32>
    %85 = vector.multi_reduction <add>, %80, %cst_50 [1] : vector<8x32xf32> to vector<8xf32>
    %86 = vector.shape_cast %85 : vector<8xf32> to vector<8x1xf32>
    %cst_51 = arith.constant 3.200000e+01 : f32
    %87 = vector.broadcast %cst_51 : f32 to vector<8x1xf32>
    %88 = arith.divf %86, %87 : vector<8x1xf32>
    %89 = vector.broadcast %88 : vector<8x1xf32> to vector<8x32xf32>
    %90 = arith.subf %80, %89 : vector<8x32xf32>
    %91 = arith.mulf %90, %90 : vector<8x32xf32>
    %cst_52 = arith.constant dense<0.000000e+00> : vector<8xf32>
    %92 = vector.multi_reduction <add>, %91, %cst_52 [1] : vector<8x32xf32> to vector<8xf32>
    %93 = vector.shape_cast %92 : vector<8xf32> to vector<8x1xf32>
    %cst_53 = arith.constant 3.200000e+01 : f32
    %94 = vector.broadcast %cst_53 : f32 to vector<8x1xf32>
    %95 = arith.divf %93, %94 : vector<8x1xf32>
    %96 = vector.broadcast %88 : vector<8x1xf32> to vector<8x32xf32>
    %97 = arith.subf %80, %96 : vector<8x32xf32>
    %cst_54 = arith.constant 9.99999974E-6 : f32
    %98 = vector.broadcast %cst_54 : f32 to vector<8x1xf32>
    %99 = arith.addf %95, %98 : vector<8x1xf32>
    %100 = math.rsqrt %99 : vector<8x1xf32>
    %101 = vector.broadcast %100 : vector<8x1xf32> to vector<8x32xf32>
    %102 = arith.mulf %97, %101 : vector<8x32xf32>
    %103 = vector.broadcast %82 : vector<1x32xf32> to vector<8x32xf32>
    %104 = arith.mulf %102, %103 : vector<8x32xf32>
    %105 = vector.broadcast %84 : vector<1x32xf32> to vector<8x32xf32>
    %106 = arith.addf %104, %105 : vector<8x32xf32>
    %107 = arith.negf %106 : vector<8x32xf32>
    %108 = math.exp %107 : vector<8x32xf32>
    %cst_55 = arith.constant 1.000000e+00 : f32
    %109 = vector.broadcast %cst_55 : f32 to vector<8x32xf32>
    %110 = arith.addf %109, %108 : vector<8x32xf32>
    %111 = arith.divf %109, %110 : vector<8x32xf32>
    %112 = arith.mulf %106, %111 : vector<8x32xf32>
    %c0_56 = arith.constant 0 : index
    %c0_57 = arith.constant 0 : index
    %c0_58 = arith.constant 0 : index
    %113 = vector.load %arg17[%c0_56, %c0_57, %c0_58] : memref<2x32x32xf32, #tpu.memory_space<vmem>>, vector<1x32x32xf32>
    %114 = vector.shape_cast %113 : vector<1x32x32xf32> to vector<32x32xf32>
    %cst_59 = arith.constant dense<0.000000e+00> : vector<8x32xf32>
    %115 = tpu.matmul %112, %114, %cst_59 {dimension_numbers = #tpu.dot_dimension_numbers<[1], [0], [0], [1], [0, 0, 1, 1], [], []>} : vector<8x32xf32>, vector<32x32xf32>, vector<8x32xf32> -> vector<8x32xf32>
    %c0_60 = arith.constant 0 : index
    %c0_61 = arith.constant 0 : index
    %c0_62 = arith.constant 0 : index
    %116 = vector.load %arg18[%c0_60, %c0_61, %c0_62] : memref<2x1x32xf32, #tpu.memory_space<vmem>>, vector<1x1x32xf32>
    %117 = vector.shape_cast %116 : vector<1x1x32xf32> to vector<1x32xf32>
    %118 = vector.broadcast %117 : vector<1x32xf32> to vector<8x32xf32>
    %119 = arith.addf %115, %118 : vector<8x32xf32>
    %120 = arith.addf %39, %119 : vector<8x32xf32>
    %c1 = arith.constant 1 : index
    %c0_63 = arith.constant 0 : index
    %c0_64 = arith.constant 0 : index
    %121 = vector.load %arg11[%c1, %c0_63, %c0_64] : memref<2x1x32xf32, #tpu.memory_space<vmem>>, vector<1x1x32xf32>
    %122 = vector.shape_cast %121 : vector<1x1x32xf32> to vector<1x32xf32>
    %c1_65 = arith.constant 1 : index
    %c0_66 = arith.constant 0 : index
    %c0_67 = arith.constant 0 : index
    %123 = vector.load %arg12[%c1_65, %c0_66, %c0_67] : memref<2x1x32xf32, #tpu.memory_space<vmem>>, vector<1x1x32xf32>
    %124 = vector.shape_cast %123 : vector<1x1x32xf32> to vector<1x32xf32>
    %cst_68 = arith.constant dense<0.000000e+00> : vector<8xf32>
    %125 = vector.multi_reduction <add>, %120, %cst_68 [1] : vector<8x32xf32> to vector<8xf32>
    %126 = vector.shape_cast %125 : vector<8xf32> to vector<8x1xf32>
    %cst_69 = arith.constant 3.200000e+01 : f32
    %127 = vector.broadcast %cst_69 : f32 to vector<8x1xf32>
    %128 = arith.divf %126, %127 : vector<8x1xf32>
    %129 = vector.broadcast %128 : vector<8x1xf32> to vector<8x32xf32>
    %130 = arith.subf %120, %129 : vector<8x32xf32>
    %131 = arith.mulf %130, %130 : vector<8x32xf32>
    %cst_70 = arith.constant dense<0.000000e+00> : vector<8xf32>
    %132 = vector.multi_reduction <add>, %131, %cst_70 [1] : vector<8x32xf32> to vector<8xf32>
    %133 = vector.shape_cast %132 : vector<8xf32> to vector<8x1xf32>
    %cst_71 = arith.constant 3.200000e+01 : f32
    %134 = vector.broadcast %cst_71 : f32 to vector<8x1xf32>
    %135 = arith.divf %133, %134 : vector<8x1xf32>
    %136 = vector.broadcast %128 : vector<8x1xf32> to vector<8x32xf32>
    %137 = arith.subf %120, %136 : vector<8x32xf32>
    %cst_72 = arith.constant 9.99999974E-6 : f32
    %138 = vector.broadcast %cst_72 : f32 to vector<8x1xf32>
    %139 = arith.addf %135, %138 : vector<8x1xf32>
    %140 = math.rsqrt %139 : vector<8x1xf32>
    %141 = vector.broadcast %140 : vector<8x1xf32> to vector<8x32xf32>
    %142 = arith.mulf %137, %141 : vector<8x32xf32>
    %143 = vector.broadcast %122 : vector<1x32xf32> to vector<8x32xf32>
    %144 = arith.mulf %142, %143 : vector<8x32xf32>
    %145 = vector.broadcast %124 : vector<1x32xf32> to vector<8x32xf32>
    %146 = arith.addf %144, %145 : vector<8x32xf32>
    %147 = arith.negf %146 : vector<8x32xf32>
    %148 = math.exp %147 : vector<8x32xf32>
    %cst_73 = arith.constant 1.000000e+00 : f32
    %149 = vector.broadcast %cst_73 : f32 to vector<8x32xf32>
    %150 = arith.addf %149, %148 : vector<8x32xf32>
    %151 = arith.divf %149, %150 : vector<8x32xf32>
    %152 = arith.mulf %146, %151 : vector<8x32xf32>
    %c1_74 = arith.constant 1 : index
    %c0_75 = arith.constant 0 : index
    %c0_76 = arith.constant 0 : index
    %153 = vector.load %arg13[%c1_74, %c0_75, %c0_76] : memref<2x32x32xf32, #tpu.memory_space<vmem>>, vector<1x32x32xf32>
    %154 = vector.shape_cast %153 : vector<1x32x32xf32> to vector<32x32xf32>
    %cst_77 = arith.constant dense<0.000000e+00> : vector<8x32xf32>
    %155 = tpu.matmul %152, %154, %cst_77 {dimension_numbers = #tpu.dot_dimension_numbers<[1], [0], [0], [1], [0, 0, 1, 1], [], []>} : vector<8x32xf32>, vector<32x32xf32>, vector<8x32xf32> -> vector<8x32xf32>
    %c1_78 = arith.constant 1 : index
    %c0_79 = arith.constant 0 : index
    %c0_80 = arith.constant 0 : index
    %156 = vector.load %arg14[%c1_78, %c0_79, %c0_80] : memref<2x1x32xf32, #tpu.memory_space<vmem>>, vector<1x1x32xf32>
    %157 = vector.shape_cast %156 : vector<1x1x32xf32> to vector<1x32xf32>
    %158 = vector.broadcast %157 : vector<1x32xf32> to vector<8x32xf32>
    %159 = arith.addf %155, %158 : vector<8x32xf32>
    %160 = vector.extract_strided_slice %33 {offsets = [0, 32], sizes = [8, 32], strides = [1, 1]} : vector<8x64xf32> to vector<8x32xf32>
    %161 = arith.addf %159, %160 : vector<8x32xf32>
    %c1_81 = arith.constant 1 : index
    %c0_82 = arith.constant 0 : index
    %c0_83 = arith.constant 0 : index
    %162 = vector.load %arg15[%c1_81, %c0_82, %c0_83] : memref<2x1x32xf32, #tpu.memory_space<vmem>>, vector<1x1x32xf32>
    %163 = vector.shape_cast %162 : vector<1x1x32xf32> to vector<1x32xf32>
    %c1_84 = arith.constant 1 : index
    %c0_85 = arith.constant 0 : index
    %c0_86 = arith.constant 0 : index
    %164 = vector.load %arg16[%c1_84, %c0_85, %c0_86] : memref<2x1x32xf32, #tpu.memory_space<vmem>>, vector<1x1x32xf32>
    %165 = vector.shape_cast %164 : vector<1x1x32xf32> to vector<1x32xf32>
    %cst_87 = arith.constant dense<0.000000e+00> : vector<8xf32>
    %166 = vector.multi_reduction <add>, %161, %cst_87 [1] : vector<8x32xf32> to vector<8xf32>
    %167 = vector.shape_cast %166 : vector<8xf32> to vector<8x1xf32>
    %cst_88 = arith.constant 3.200000e+01 : f32
    %168 = vector.broadcast %cst_88 : f32 to vector<8x1xf32>
    %169 = arith.divf %167, %168 : vector<8x1xf32>
    %170 = vector.broadcast %169 : vector<8x1xf32> to vector<8x32xf32>
    %171 = arith.subf %161, %170 : vector<8x32xf32>
    %172 = arith.mulf %171, %171 : vector<8x32xf32>
    %cst_89 = arith.constant dense<0.000000e+00> : vector<8xf32>
    %173 = vector.multi_reduction <add>, %172, %cst_89 [1] : vector<8x32xf32> to vector<8xf32>
    %174 = vector.shape_cast %173 : vector<8xf32> to vector<8x1xf32>
    %cst_90 = arith.constant 3.200000e+01 : f32
    %175 = vector.broadcast %cst_90 : f32 to vector<8x1xf32>
    %176 = arith.divf %174, %175 : vector<8x1xf32>
    %177 = vector.broadcast %169 : vector<8x1xf32> to vector<8x32xf32>
    %178 = arith.subf %161, %177 : vector<8x32xf32>
    %cst_91 = arith.constant 9.99999974E-6 : f32
    %179 = vector.broadcast %cst_91 : f32 to vector<8x1xf32>
    %180 = arith.addf %176, %179 : vector<8x1xf32>
    %181 = math.rsqrt %180 : vector<8x1xf32>
    %182 = vector.broadcast %181 : vector<8x1xf32> to vector<8x32xf32>
    %183 = arith.mulf %178, %182 : vector<8x32xf32>
    %184 = vector.broadcast %163 : vector<1x32xf32> to vector<8x32xf32>
    %185 = arith.mulf %183, %184 : vector<8x32xf32>
    %186 = vector.broadcast %165 : vector<1x32xf32> to vector<8x32xf32>
    %187 = arith.addf %185, %186 : vector<8x32xf32>
    %188 = arith.negf %187 : vector<8x32xf32>
    %189 = math.exp %188 : vector<8x32xf32>
    %cst_92 = arith.constant 1.000000e+00 : f32
    %190 = vector.broadcast %cst_92 : f32 to vector<8x32xf32>
    %191 = arith.addf %190, %189 : vector<8x32xf32>
    %192 = arith.divf %190, %191 : vector<8x32xf32>
    %193 = arith.mulf %187, %192 : vector<8x32xf32>
    %c1_93 = arith.constant 1 : index
    %c0_94 = arith.constant 0 : index
    %c0_95 = arith.constant 0 : index
    %194 = vector.load %arg17[%c1_93, %c0_94, %c0_95] : memref<2x32x32xf32, #tpu.memory_space<vmem>>, vector<1x32x32xf32>
    %195 = vector.shape_cast %194 : vector<1x32x32xf32> to vector<32x32xf32>
    %cst_96 = arith.constant dense<0.000000e+00> : vector<8x32xf32>
    %196 = tpu.matmul %193, %195, %cst_96 {dimension_numbers = #tpu.dot_dimension_numbers<[1], [0], [0], [1], [0, 0, 1, 1], [], []>} : vector<8x32xf32>, vector<32x32xf32>, vector<8x32xf32> -> vector<8x32xf32>
    %c1_97 = arith.constant 1 : index
    %c0_98 = arith.constant 0 : index
    %c0_99 = arith.constant 0 : index
    %197 = vector.load %arg18[%c1_97, %c0_98, %c0_99] : memref<2x1x32xf32, #tpu.memory_space<vmem>>, vector<1x1x32xf32>
    %198 = vector.shape_cast %197 : vector<1x1x32xf32> to vector<1x32xf32>
    %199 = vector.broadcast %198 : vector<1x32xf32> to vector<8x32xf32>
    %200 = arith.addf %196, %199 : vector<8x32xf32>
    %201 = arith.addf %120, %200 : vector<8x32xf32>
    %c0_100 = arith.constant 0 : index
    %c0_101 = arith.constant 0 : index
    %202 = vector.load %arg19[%c0_100, %c0_101] : memref<1x32xf32, #tpu.memory_space<vmem>>, vector<1x32xf32>
    %c0_102 = arith.constant 0 : index
    %c0_103 = arith.constant 0 : index
    %203 = vector.load %arg20[%c0_102, %c0_103] : memref<1x32xf32, #tpu.memory_space<vmem>>, vector<1x32xf32>
    %cst_104 = arith.constant dense<0.000000e+00> : vector<8xf32>
    %204 = vector.multi_reduction <add>, %201, %cst_104 [1] : vector<8x32xf32> to vector<8xf32>
    %205 = vector.shape_cast %204 : vector<8xf32> to vector<8x1xf32>
    %cst_105 = arith.constant 3.200000e+01 : f32
    %206 = vector.broadcast %cst_105 : f32 to vector<8x1xf32>
    %207 = arith.divf %205, %206 : vector<8x1xf32>
    %208 = vector.broadcast %207 : vector<8x1xf32> to vector<8x32xf32>
    %209 = arith.subf %201, %208 : vector<8x32xf32>
    %210 = arith.mulf %209, %209 : vector<8x32xf32>
    %cst_106 = arith.constant dense<0.000000e+00> : vector<8xf32>
    %211 = vector.multi_reduction <add>, %210, %cst_106 [1] : vector<8x32xf32> to vector<8xf32>
    %212 = vector.shape_cast %211 : vector<8xf32> to vector<8x1xf32>
    %cst_107 = arith.constant 3.200000e+01 : f32
    %213 = vector.broadcast %cst_107 : f32 to vector<8x1xf32>
    %214 = arith.divf %212, %213 : vector<8x1xf32>
    %215 = vector.broadcast %207 : vector<8x1xf32> to vector<8x32xf32>
    %216 = arith.subf %201, %215 : vector<8x32xf32>
    %cst_108 = arith.constant 9.99999974E-6 : f32
    %217 = vector.broadcast %cst_108 : f32 to vector<8x1xf32>
    %218 = arith.addf %214, %217 : vector<8x1xf32>
    %219 = math.rsqrt %218 : vector<8x1xf32>
    %220 = vector.broadcast %219 : vector<8x1xf32> to vector<8x32xf32>
    %221 = arith.mulf %216, %220 : vector<8x32xf32>
    %222 = vector.broadcast %202 : vector<1x32xf32> to vector<8x32xf32>
    %223 = arith.mulf %221, %222 : vector<8x32xf32>
    %224 = vector.broadcast %203 : vector<1x32xf32> to vector<8x32xf32>
    %225 = arith.addf %223, %224 : vector<8x32xf32>
    %cst_109 = arith.constant 0.000000e+00 : f32
    %226 = vector.broadcast %cst_109 : f32 to vector<8x32xf32>
    %227 = arith.cmpf oge, %225, %226 : vector<8x32xf32>
    %cst_110 = arith.constant 0.00999999977 : f32
    %228 = vector.broadcast %cst_110 : f32 to vector<8x32xf32>
    %229 = arith.mulf %228, %225 : vector<8x32xf32>
    %230 = arith.select %227, %225, %229 : vector<8x32xi1>, vector<8x32xf32>
    %c0_111 = arith.constant 0 : index
    %c0_112 = arith.constant 0 : index
    %231 = vector.load %arg21[%c0_111, %c0_112] : memref<32x128xf32, #tpu.memory_space<vmem>>, vector<32x128xf32>
    %cst_113 = arith.constant dense<0.000000e+00> : vector<8x128xf32>
    %232 = tpu.matmul %230, %231, %cst_113 {dimension_numbers = #tpu.dot_dimension_numbers<[1], [0], [0], [1], [0, 0, 1, 1], [], []>} : vector<8x32xf32>, vector<32x128xf32>, vector<8x128xf32> -> vector<8x128xf32>
    %c0_114 = arith.constant 0 : index
    %c0_115 = arith.constant 0 : index
    %233 = vector.load %arg22[%c0_114, %c0_115] : memref<1x128xf32, #tpu.memory_space<vmem>>, vector<1x128xf32>
    %234 = vector.broadcast %233 : vector<1x128xf32> to vector<8x128xf32>
    %235 = arith.addf %232, %234 : vector<8x128xf32>
    %c0_116 = arith.constant 0 : index
    %c0_117 = arith.constant 0 : index
    %236 = vector.load %arg23[%c0_116, %c0_117] : memref<8x128xf32, #tpu.memory_space<vmem>>, vector<8x128xf32>
    tpu.vector_store %arg23[%c0_116, %c0_117], %235 {strides = array<i32>} : memref<8x128xf32, #tpu.memory_space<vmem>>, vector<8x128xf32>,
    return
  }
  func.func @transform_0(%arg0: i32) -> (i32, i32) {
    %c0_i32 = arith.constant 0 : i32
    %c0_i32_0 = arith.constant 0 : i32
    return %arg0, %c0_i32 : i32, i32
  }
  func.func @transform_1(%arg0: i32) -> (i32, i32) {
    %c0_i32 = arith.constant 0 : i32
    %c0_i32_0 = arith.constant 0 : i32
    return %arg0, %c0_i32 : i32, i32
  }
  func.func @transform_2(%arg0: i32) -> (i32, i32) {
    %c0_i32 = arith.constant 0 : i32
    %c0_i32_0 = arith.constant 0 : i32
    %c0_i32_1 = arith.constant 0 : i32
    return %c0_i32, %c0_i32_0 : i32, i32
  }
  func.func @transform_3(%arg0: i32) -> (i32, i32) {
    %c0_i32 = arith.constant 0 : i32
    %c0_i32_0 = arith.constant 0 : i32
    %c0_i32_1 = arith.constant 0 : i32
    return %c0_i32, %c0_i32_0 : i32, i32
  }
  func.func @transform_4(%arg0: i32) -> (i32, i32) {
    %c0_i32 = arith.constant 0 : i32
    %c0_i32_0 = arith.constant 0 : i32
    %c0_i32_1 = arith.constant 0 : i32
    return %c0_i32, %c0_i32_0 : i32, i32
  }
  func.func @transform_5(%arg0: i32) -> (i32, i32) {
    %c0_i32 = arith.constant 0 : i32
    %c0_i32_0 = arith.constant 0 : i32
    %c0_i32_1 = arith.constant 0 : i32
    return %c0_i32, %c0_i32_0 : i32, i32
  }
  func.func @transform_6(%arg0: i32) -> (i32, i32) {
    %c0_i32 = arith.constant 0 : i32
    %c0_i32_0 = arith.constant 0 : i32
    %c0_i32_1 = arith.constant 0 : i32
    return %c0_i32, %c0_i32_0 : i32, i32
  }
  func.func @transform_7(%arg0: i32) -> (i32, i32) {
    %c0_i32 = arith.constant 0 : i32
    %c0_i32_0 = arith.constant 0 : i32
    %c0_i32_1 = arith.constant 0 : i32
    return %c0_i32, %c0_i32_0 : i32, i32
  }
  func.func @transform_8(%arg0: i32) -> (i32, i32) {
    %c0_i32 = arith.constant 0 : i32
    %c0_i32_0 = arith.constant 0 : i32
    %c0_i32_1 = arith.constant 0 : i32
    return %c0_i32, %c0_i32_0 : i32, i32
  }
  func.func @transform_9(%arg0: i32) -> (i32, i32) {
    %c0_i32 = arith.constant 0 : i32
    %c0_i32_0 = arith.constant 0 : i32
    %c0_i32_1 = arith.constant 0 : i32
    return %c0_i32, %c0_i32_0 : i32, i32
  }
  func.func @transform_10(%arg0: i32) -> (i32, i32, i32) {
    %c0_i32 = arith.constant 0 : i32
    %c0_i32_0 = arith.constant 0 : i32
    %c0_i32_1 = arith.constant 0 : i32
    %c0_i32_2 = arith.constant 0 : i32
    return %c0_i32, %c0_i32_0, %c0_i32_1 : i32, i32, i32
  }
  func.func @transform_11(%arg0: i32) -> (i32, i32, i32) {
    %c0_i32 = arith.constant 0 : i32
    %c0_i32_0 = arith.constant 0 : i32
    %c0_i32_1 = arith.constant 0 : i32
    %c0_i32_2 = arith.constant 0 : i32
    return %c0_i32, %c0_i32_0, %c0_i32_1 : i32, i32, i32
  }
  func.func @transform_12(%arg0: i32) -> (i32, i32, i32) {
    %c0_i32 = arith.constant 0 : i32
    %c0_i32_0 = arith.constant 0 : i32
    %c0_i32_1 = arith.constant 0 : i32
    %c0_i32_2 = arith.constant 0 : i32
    return %c0_i32, %c0_i32_0, %c0_i32_1 : i32, i32, i32
  }
  func.func @transform_13(%arg0: i32) -> (i32, i32, i32) {
    %c0_i32 = arith.constant 0 : i32
    %c0_i32_0 = arith.constant 0 : i32
    %c0_i32_1 = arith.constant 0 : i32
    %c0_i32_2 = arith.constant 0 : i32
    return %c0_i32, %c0_i32_0, %c0_i32_1 : i32, i32, i32
  }
  func.func @transform_14(%arg0: i32) -> (i32, i32, i32) {
    %c0_i32 = arith.constant 0 : i32
    %c0_i32_0 = arith.constant 0 : i32
    %c0_i32_1 = arith.constant 0 : i32
    %c0_i32_2 = arith.constant 0 : i32
    return %c0_i32, %c0_i32_0, %c0_i32_1 : i32, i32, i32
  }
  func.func @transform_15(%arg0: i32) -> (i32, i32, i32) {
    %c0_i32 = arith.constant 0 : i32
    %c0_i32_0 = arith.constant 0 : i32
    %c0_i32_1 = arith.constant 0 : i32
    %c0_i32_2 = arith.constant 0 : i32
    return %c0_i32, %c0_i32_0, %c0_i32_1 : i32, i32, i32
  }
  func.func @transform_16(%arg0: i32) -> (i32, i32, i32) {
    %c0_i32 = arith.constant 0 : i32
    %c0_i32_0 = arith.constant 0 : i32
    %c0_i32_1 = arith.constant 0 : i32
    %c0_i32_2 = arith.constant 0 : i32
    return %c0_i32, %c0_i32_0, %c0_i32_1 : i32, i32, i32
  }
  func.func @transform_17(%arg0: i32) -> (i32, i32, i32) {
    %c0_i32 = arith.constant 0 : i32
    %c0_i32_0 = arith.constant 0 : i32
    %c0_i32_1 = arith.constant 0 : i32
    %c0_i32_2 = arith.constant 0 : i32
    return %c0_i32, %c0_i32_0, %c0_i32_1 : i32, i32, i32
  }
  func.func @transform_18(%arg0: i32) -> (i32, i32) {
    %c0_i32 = arith.constant 0 : i32
    %c0_i32_0 = arith.constant 0 : i32
    %c0_i32_1 = arith.constant 0 : i32
    return %c0_i32, %c0_i32_0 : i32, i32
  }
  func.func @transform_19(%arg0: i32) -> (i32, i32) {
    %c0_i32 = arith.constant 0 : i32
    %c0_i32_0 = arith.constant 0 : i32
    %c0_i32_1 = arith.constant 0 : i32
    return %c0_i32, %c0_i32_0 : i32, i32
  }
  func.func @transform_20(%arg0: i32) -> (i32, i32) {
    %c0_i32 = arith.constant 0 : i32
    %c0_i32_0 = arith.constant 0 : i32
    %c0_i32_1 = arith.constant 0 : i32
    return %c0_i32, %c0_i32_0 : i32, i32
  }
  func.func @transform_21(%arg0: i32) -> (i32, i32) {
    %c0_i32 = arith.constant 0 : i32
    %c0_i32_0 = arith.constant 0 : i32
    %c0_i32_1 = arith.constant 0 : i32
    return %c0_i32, %c0_i32_0 : i32, i32
  }
  func.func @transform_22(%arg0: i32) -> (i32, i32) {
    %c0_i32 = arith.constant 0 : i32
    %c0_i32_0 = arith.constant 0 : i32
    return %arg0, %c0_i32 : i32, i32
  }
}

</mosaic_0001>

<bundles_post_ra>
// kernel: tab_resnet_forward.1
= control target key start
LH: loop header
LB: loop body
LE: loop exit
PB: predicated region body
PF: predicated region fallthrough
CT: control target
= control target key end

     0   :  { %s1679_s0 = inlined_call_operand.vmem [shape: f32[8,14], index: 0, kind: input, shape index: {}]   ;;  %s1680_s1 = inlined_call_operand.vmem [shape: f32[8,16], index: 1, kind: input, shape index: {}]   ;;  %s1681_s2 = inlined_call_operand.vmem [shape: f32[16,16], index: 2, kind: input, shape index: {}]   ;;  %s1682_s3 = inlined_call_operand.vmem [shape: f32[1,16], index: 3, kind: input, shape index: {}]   ;;  %s1683_s4 = inlined_call_operand.vmem [shape: f32[16,16], index: 4, kind: input, shape index: {}]   ;;  %s1684_s5 = inlined_call_operand.vmem [shape: f32[1,16], index: 5, kind: input, shape index: {}]   ;;  %s1685_s6 = inlined_call_operand.vmem [shape: f32[14,32], index: 6, kind: input, shape index: {}]   ;;  %s1686_s7 = inlined_call_operand.vmem [shape: f32[1,32], index: 7, kind: input, shape index: {}]   ;;  %s1687_s8 = inlined_call_operand.vmem [shape: f32[16,64], index: 8, kind: input, shape index: {}]   ;;  %s1688_s9 = inlined_call_operand.vmem [shape: f32[1,64], index: 9, kind: input, shape index: {}]   ;;  %s1689_s10 = inlined_call_operand.vmem [shape: f32[2,1,32], index: 10, kind: input, shape index: {}]   ;;  %s1690_s11 = inlined_call_operand.vmem [shape: f32[2,1,32], index: 11, kind: input, shape index: {}]   ;;  %s1691_s12 = inlined_call_operand.vmem [shape: f32[2,32,32], index: 12, kind: input, shape index: {}]   ;;  %s1692_s13 = inlined_call_operand.vmem [shape: f32[2,1,32], index: 13, kind: input, shape index: {}]   ;;  %s1693_s14 = inlined_call_operand.vmem [shape: f32[2,1,32], index: 14, kind: input, shape index: {}]   ;;  %s1694_s15 = inlined_call_operand.vmem [shape: f32[2,1,32], index: 15, kind: input, shape index: {}]   ;;  %s1695_s16 = inlined_call_operand.vmem [shape: f32[2,32,32], index: 16, kind: input, shape index: {}]   ;;  %s1696_s17 = inlined_call_operand.vmem [shape: f32[2,1,32], index: 17, kind: input, shape index: {}]   ;;  %s1697_s18 = inlined_call_operand.vmem [shape: f32[1,32], index: 18, kind: input, shape index: {}]   ;;  %s1698_s19 = inlined_call_operand.vmem [shape: f32[1,32], index: 19, kind: input, shape index: {}]   ;;  %s1699_s20 = inlined_call_operand.vmem [shape: f32[32,128], index: 20, kind: input, shape index: {}]   ;;  %s1700_s21 = inlined_call_operand.vmem [shape: f32[1,128], index: 21, kind: input, shape index: {}]   ;;  %s1701_s22 = inlined_call_operand.hbm [shape: f32[8,128], index: 22, kind: output, shape index: {}]  }
   0x1   :  { %1705 = sst [smem:[#allocation5_spill]] %s1679_s0 }
   0x2   :  { %1706 = sst [smem:[#allocation6_spill]] %s1680_s1 }
   0x3   :  { %1707 = sst [smem:[#allocation7_spill]] %s1681_s2 }
   0x4   :  { %1708 = sst [smem:[#allocation8_spill]] %s1682_s3 }
   0x5   :  { %1709 = sst [smem:[#allocation9_spill]] %s1683_s4 }
   0x6   :  { %1710 = sst [smem:[#allocation10_spill]] %s1684_s5 }
   0x7   :  { %1711 = sst [smem:[#allocation11_spill]] %s1685_s6 }
   0x8   :  { %s1712_s29 = sld [smem:[#allocation7_spill]]  ;;  %v1339_v2 = vmov 0.0|0.0   ;;  %vm1340_vm0 = vmmov 0   ;;  %v1341_v4 = vmov 0.0  }
   0x9   :  { %1228 = vmatprep.subr.bf16.mxu1 %v1339_v2  ;;  %1149 = vmatprep.mubr.msk.f32.mxu1 %vm1340_vm0, %v1341_v4 }
   0xe   :  { %v73_v0 = vld [vmem:[%s1712_s29] sm:$0xff]  ;;  %v74_v1 = vld [vmem:[%s1712_s29 + $0x8] sm:$0xff] }
   0xf   :  { %v1229_v3 = vpack.c.bf16 %v74_v1, %v73_v0 }
  0x10   :  { %27 = vsyncpa [#allocation3], 0  ;;  %1234 = vmatprep.subr.bf16.mxu0 %v1339_v2  ;;  %1163 = vmatprep.mubr.msk.f32.mxu0 %vm1340_vm0, %v1341_v4  ;;  %s1713_s1 = sld [smem:[#allocation6_spill]]  ;;  %vm82_vm1 = vcmask 130048   ;;  %s1714_s6 = sld [smem:[#allocation9_spill]]  ;;  %vm355_vm2 = vcmask 1045504  }
  0x11   :  { %1230 = vmatpush3.bf16.msra.mxu1 %v1229_v3  ;;  %s1715_s3 = sld [smem:[#allocation8_spill]]  ;;  %s1716_s30 = sld [smem:[#allocation11_spill]]  ;;  %vm1342_vm3 = vmmov 1   ;;  %vm351_vm5 = vcmask 113664   ;;  %v259_v22 = vld [vmem:[%s1687_s8] sm:$0xff]  ;;  %v260_v23 = vld [vmem:[%s1687_s8 + $0x8] sm:$0xff] }
  0x12   :  { %1231 = vmatprep.subr.bf16.mxu1 %v1339_v2  ;;  %vm1239_vm4 = vmpackc.low %vm355_vm2, %vm1342_vm3  ;;  %s1717_s5 = sld [smem:[#allocation5_spill]]  ;;  %v1235_v24 = vpack.c.bf16 %v260_v23, %v259_v22  ;;  %v1067_v29 = vld [vmem:[%s1686_s7] ss:$0 sm:$0xff]  ;;  %vm431_vm6 = vcmask 261120   ;;  %v468_v50 = vld [vmem:[%s1691_s12 + $0x8] sm:$0xff]  ;;  %s1343_s2 = smov 96  }
  0x13   :  { %v467_v49 = vld [vmem:[%s1691_s12] sm:$0xff]  ;;  %v469_v51 = vld [vmem:[%s1691_s12 + $0x10] sm:$0xff]  ;;  %v470_v53 = vld [vmem:[%s1691_s12 + $0x18] sm:$0xff] }
  0x14   :  { %1236 = vmatpush3.bf16.msra.mxu0 %v1235_v24  ;;  %v1242_v52 = vpack.c.bf16 %v468_v50, %v467_v49  ;;  %v1245_v54 = vpack.c.bf16 %v470_v53, %v469_v51  ;;  %v1070_v61 = vld [vmem:[%s1689_s10] ss:$0 sm:$0xff]  ;;  %v589_v23 = vld [vmem:[%s1695_s16 + $0x8] sm:$0xff]  ;;  %v590_v24 = vld [vmem:[%s1695_s16 + $0x10] sm:$0xff] }
  0x15   :  { %1241 = vmatprep.subr.bf16.mxu0 %v1339_v2  ;;  %v1071_v63 = vld [vmem:[%s1690_s11] ss:$0 sm:$0xff] }
  0x16   :  { %v72_v5 = vld [vmem:[%s1713_s1] sm:$0xff]  ;;  %v164_v7 = vld [vmem:[%s1714_s6 + $0x8] sm:$0xff] }
  0x17   :  { %1150 = vmatmul.mubr.msk.f32.vlgmr.msra.gmra.mrb[0].mxu1 %vm82_vm1, %v72_v5  ;;  %v163_v6 = vld [vmem:[%s1714_s6] sm:$0xff]  ;;  %v343_v17 = vld [vmem:[%s1716_s30 + $0x8] sm:$0x3f] }
  0x18   :  { %1156 = vmatprep.mubr.msk.f32.mxu1 %vm1340_vm0, %v1341_v4  ;;  %v1232_v8 = vpack.c.bf16 %v164_v7, %v163_v6  ;;  %v1058_v9 = vld [vmem:[%s1715_s3] ss:$0 sm:$0xff]  ;;  %s1718_s3 = sld [smem:[#allocation10_spill]] }
  0x19   :  { %v342_v16 = vld [vmem:[%s1716_s30] sm:$0xff] }
  0x1a   :  { %1233 = vmatpush3.bf16.msra.mxu1 %v1232_v8  ;;  %v1238_v19 = vpack.c.bf16 %v343_v17, %v342_v16  ;;  %v341_v21 = vld [vmem:[%s1717_s5] sm:$0xff]  ;;  %s1344_s5 = smov [#allocation2]  }
  0x1b   :  { %1237 = vmatprep.subr.bf16.mxu1 %v1339_v2  ;;  %v588_v22 = vld [vmem:[%s1695_s16] sm:$0xff] }
  0x1e   :  { %v1061_v25 = vld [vmem:[%s1718_s3] ss:$0 sm:$0xff] }
  0xea   :  { %v152_v10 = vpop.f32.mrb[0].mxu1 }
  0xeb   :  { %v153_v11 = vadd.f32 %v1058_v9, %v152_v10  ;;  %v1151_v12 = vpop.f32.mrb[1].mxu1  ;;  %v1065_v9 = vld [vmem:[%s1688_s9] ss:$0 sm:$0xff] }
  0xec   :  { %v1073_v10 = vld [vmem:[%s1692_s13] ss:$0 sm:$0xff] }
  0xed   :  { %v1060_v13 = vmul.f32 -1.442695, %v153_v11 }
  0xef   :  { %1277 = vpow2.f32 %v1060_v13 }
  0xf9   :  { %v1278_v14 = vpop.eup %1277 }
  0xfa   :  { %v159_v15 = vadd.f32 1.0, %v1278_v14 }
  0xfc   :  { %1279 = vrcp.f32 %v159_v15 }
 0x106   :  { %v1280_v18 = vpop.eup %1279 }
 0x107   :  { %v162_v20 = vmul.f32 %v1280_v18, %v153_v11 }
 0x109   :  { %1157 = vmatmul.mubr.msk.f32.vlgmr.msra.gmra.mrb[2].mxu1 %vm82_vm1, %v162_v20 }
 0x10a   :  { %1240 = vmatpush3.bf16.msk.msra.mxu1 %vm1239_vm4, %v1238_v19  ;;  %1170 = vmatprep.mubr.msk.f32.mxu1 %vm1340_vm0, %v1341_v4 }
 0x10b   :  { %1247 = vmatprep.subr.bf16.mxu1 %v1339_v2 }
 0x10d   :  { %1171 = vmatmul.mubr.msk.f32.vlgmr.msra.gmra.mrb[4].mxu1 %vm351_vm5, %v341_v21 }
 0x10e   :  { %1192 = vmatprep.mubr.msk.f32.mxu1 %vm1340_vm0, %v1341_v4 }
 0x1dc   :  { %v241_v26 = vpop.f32.mrb[2].mxu1 }
 0x1dd   :  { %v242_v27 = vadd.f32 %v1061_v25, %v241_v26  ;;  %v1158_v28 = vpop.f32.mrb[3].mxu1  ;;  %v1248_v25 = vpack.c.bf16 %v589_v23, %v588_v22  ;;  %v591_v26 = vld [vmem:[%s1695_s16 + $0x18] sm:$0xff]  ;;  %v1098_v23 = vld [vmem:[%s1695_s16 + $0x28] sm:$0xff] }
 0x1df   :  { %v1063_v30 = vmul.f32 -1.442695, %v242_v27  ;;  %1249 = vmatpush3.bf16.msra.mxu1 %v1248_v25 }
 0x1e0   :  { %v425_v31 = vpop.f32.mrb[4].mxu1  ;;  %1250 = vmatprep.subr.bf16.mxu1 %v1339_v2 }
 0x1e1   :  { %1281 = vpow2.f32 %v1063_v30  ;;  %v1517_v32 = vadd.f32 %v1067_v29, %v425_v31  ;;  %v1172_v33 = vpop.f32.mrb[5].mxu1 }
 0x1e2   :  { %v1075_v33 = vld [vmem:[%s1693_s14] ss:$0 sm:$0xff] }
 0x1e3   :  { %v432_v34 = vsel %vm431_vm6, %v1517_v32, 0.0 }
 0x1e4   :  { %433 = vadd.xlane.f32.xlu0 %v432_v34 }
 0x1eb   :  { %v1282_v35 = vpop.eup %1281 }
 0x1ec   :  { %v248_v36 = vadd.f32 1.0, %v1282_v35  ;;  %v1076_v35 = vld [vmem:[%s1694_s15] ss:$0 sm:$0xff] }
 0x1ee   :  { %1283 = vrcp.f32 %v248_v36 }
 0x1f8   :  { %v1284_v37 = vpop.eup %1283 }
 0x1f9   :  { %v251_v38 = vmul.f32 %v1284_v37, %v242_v27  ;;  %v1251_v27 = vpack.c.bf16 %v591_v26, %v590_v24  ;;  %v1099_v24 = vld [vmem:[%s1695_s16 + $0x30] sm:$0xff]  ;;  %v1100_v26 = vld [vmem:[%s1695_s16 + $0x38] sm:$0xff] }
 0x1fb   :  { %v1064_v39 = vmul.f32 -1.442695, %v251_v38  ;;  %1252 = vmatpush3.bf16.msra.mxu1 %v1251_v27  ;;  %v1263_v27 = vpack.c.bf16 %v1100_v26, %v1099_v24 }
 0x1fc   :  { %1259 = vmatprep.subr.bf16.mxu1 %v1339_v2 }
 0x1fd   :  { %1285 = vpow2.f32 %v1064_v39 }
 0x207   :  { %v1286_v40 = vpop.eup %1285 }
 0x208   :  { %v255_v41 = vadd.f32 1.0, %v1286_v40 }
 0x20a   :  { %1287 = vrcp.f32 %v255_v41 }
 0x214   :  { %v1288_v42 = vpop.eup %1287 }
 0x215   :  { %v258_v43 = vmul.f32 %v1288_v42, %v251_v38 }
 0x217   :  { %1164 = vmatmul.mubr.msk.f32.vlgmr.msra.gmra.mrb[0].mxu0 %vm82_vm1, %v258_v43  ;;  %v1078_v43 = vld [vmem:[%s1696_s17] ss:$0 sm:$0xff] }
 0x218   :  { %1181 = vmatprep.mubr.msk.f32.mxu0 %vm1340_vm0, %v1341_v4  ;;  %1243 = vmatpush3.bf16.msra.mxu0 %v1242_v52 }
 0x219   :  { %1244 = vmatprep.subr.bf16.mxu0 %v1339_v2 }
 0x21c   :  { %1246 = vmatpush3.bf16.msra.mxu0 %v1245_v54  ;;  %v1085_v54 = vld [vmem:[%s1691_s12 + $0x20] sm:$0xff] }
 0x21d   :  { %1253 = vmatprep.subr.bf16.mxu0 %v1339_v2 }
 0x271   :  { %v434_v44 = vpop.xlane.xlu0 %433 }
 0x272   :  { %v436_v45 = vmul.f32 0.03125, %v434_v44 }
 0x274   :  { %v437_v46 = vsub.f32 %v1517_v32, %v436_v45 }
 0x276   :  { %v438_v47 = vmul.f32 %v437_v46, %v437_v46 }
 0x278   :  { %v439_v48 = vsel %vm431_vm6, %v438_v47, 0.0 }
 0x279   :  { %440 = vadd.xlane.f32.xlu0 %v439_v48 }
 0x2ea   :  { %v337_v55 = vpop.f32.mrb[0].mxu0 }
 0x2eb   :  { %v1165_v56 = vpop.f32.mrb[1].mxu0  ;;  %v338_v12 = vadd.f32 %v1065_v9, %v337_v55  ;;  %v1087_v55 = vld [vmem:[%s1691_s12 + $0x30] sm:$0xff] }
 0x306   :  { %v441_v57 = vpop.xlane.xlu0 %440 }
 0x307   :  { %v442_v58 = vmul.f32 0.03125, %v441_v57  ;;  %v1088_v57 = vld [vmem:[%s1691_s12 + $0x38] sm:$0xff] }
 0x309   :  { %v443_v59 = vadd.f32 1e-05, %v442_v58  ;;  %v1257_v58 = vpack.c.bf16 %v1088_v57, %v1087_v55  ;;  %v960_v55 = vld [vmem:[%s1699_s20 + $0x8] sm:$0xff]  ;;  %v962_v57 = vld [vmem:[%s1699_s20 + $0x18] sm:$0xff] }
 0x30b   :  { %1289 = vrsqrt.f32 %v443_v59 }
 0x315   :  { %v1290_v60 = vpop.eup %1289 }
 0x316   :  { %v445_v62 = vmul.f32 %v1290_v60, %v437_v46 }
 0x318   :  { %v452_v0 = vmul.f32 %v1070_v61, %v445_v62 }
 0x31a   :  { %v459_v1 = vadd.f32 %v1071_v63, %v452_v0  ;;  %v1082_v63 = vld [vmem:[%s1689_s10 + $0x1] ss:$0 sm:$0xff] }
 0x31c   :  { %v1072_v3 = vmul.f32 -1.442695, %v459_v1 }
 0x31e   :  { %1291 = vpow2.f32 %v1072_v3 }
 0x328   :  { %v1292_v5 = vpop.eup %1291 }
 0x329   :  { %v463_v6 = vadd.f32 1.0, %v1292_v5 }
 0x32b   :  { %1293 = vrcp.f32 %v463_v6 }
 0x335   :  { %v1294_v7 = vpop.eup %1293 }
 0x336   :  { %v466_v8 = vmul.f32 %v1294_v7, %v459_v1  ;;  %v1083_v1 = vld [vmem:[%s1690_s11 + $0x1] ss:$0 sm:$0xff] }
 0x338   :  { %1182 = vmatmul.mubr.msk.f32.vlgmr.msra.gmra.mrb[2].mxu0 %vm431_vm6, %v466_v8 }
 0x339   :  { %1203 = vmatprep.mubr.msk.f32.mxu0 %vm1340_vm0, %v1341_v4 }
 0x40b   :  { %v547_v11 = vpop.f32.mrb[2].mxu0 }
 0x40c   :  { %v548_v13 = vadd.f32 %v1073_v10, %v547_v11  ;;  %v1183_v14 = vpop.f32.mrb[3].mxu0  ;;  %v1090_v11 = vld [vmem:[%s1692_s13 + $0x1] ss:$0 sm:$0xff]  ;;  %s1050_s13 = sshll.u32 %s1344_s5, 4  ;;  %s1051_s13 = int_to_ptr.vmem [resolvable:$true] %s1050_s13 }
 0x40d   :  { %p1320_p1 = scmp.lt.s32.totalorder %s1051_s13, %s1051_s13 }
 0x40e   :  { %v551_v15 = vadd.f32 %v548_v13, %v338_v12 }
 0x410   :  { %v554_v16 = vsel %vm431_vm6, %v551_v15, 0.0 }
 0x411   :  { %555 = vadd.xlane.f32.xlu1 %v554_v16 }
 0x49e   :  { %v556_v17 = vpop.xlane.xlu1 %555 }
 0x49f   :  { %v557_v18 = vmul.f32 0.03125, %v556_v17 }
 0x4a1   :  { %v558_v19 = vsub.f32 %v551_v15, %v557_v18 }
 0x4a3   :  { %v559_v20 = vmul.f32 %v558_v19, %v558_v19 }
 0x4a5   :  { %v560_v21 = vsel %vm431_vm6, %v559_v20, 0.0 }
 0x4a6   :  { %561 = vadd.xlane.f32.xlu1 %v560_v21 }
 0x533   :  { %v562_v28 = vpop.xlane.xlu1 %561 }
 0x534   :  { %v563_v29 = vmul.f32 0.03125, %v562_v28 }
 0x536   :  { %v564_v30 = vadd.f32 1e-05, %v563_v29 }
 0x538   :  { %1295 = vrsqrt.f32 %v564_v30 }
 0x542   :  { %v1296_v31 = vpop.eup %1295 }
 0x543   :  { %v566_v34 = vmul.f32 %v1296_v31, %v558_v19 }
 0x545   :  { %v573_v36 = vmul.f32 %v1075_v33, %v566_v34  ;;  %v1094_v33 = vld [vmem:[%s1693_s14 + $0x1] ss:$0 sm:$0xff] }
 0x547   :  { %v580_v37 = vadd.f32 %v1076_v35, %v573_v36  ;;  %v1095_v35 = vld [vmem:[%s1694_s15 + $0x1] ss:$0 sm:$0xff] }
 0x549   :  { %v1077_v38 = vmul.f32 -1.442695, %v580_v37 }
 0x54b   :  { %1297 = vpow2.f32 %v1077_v38 }
 0x555   :  { %v1298_v39 = vpop.eup %1297 }
 0x556   :  { %v584_v40 = vadd.f32 1.0, %v1298_v39 }
 0x558   :  { %1299 = vrcp.f32 %v584_v40 }
 0x562   :  { %v1300_v41 = vpop.eup %1299 }
 0x563   :  { %v587_v42 = vmul.f32 %v1300_v41, %v580_v37 }
 0x565   :  { %1193 = vmatmul.mubr.msk.f32.vlgmr.msra.gmra.mrb[6].mxu1 %vm431_vm6, %v587_v42 }
 0x566   :  { %1214 = vmatprep.mubr.msk.f32.mxu1 %vm1340_vm0, %v1341_v4 }
 0x638   :  { %v668_v44 = vpop.f32.mrb[6].mxu1 }
 0x639   :  { %v669_v45 = vadd.f32 %v1078_v43, %v668_v44  ;;  %v1194_v46 = vpop.f32.mrb[7].mxu1  ;;  %v1102_v43 = vld [vmem:[%s1696_s17 + $0x1] ss:$0 sm:$0xff] }
 0x63b   :  { %v1584_v47 = vadd.f32 %v669_v45, %v1517_v32  ;;  %v1086_v32 = vld [vmem:[%s1691_s12 + $0x28] sm:$0xff] }
 0x63c   :  { %v1254_v56 = vpack.c.bf16 %v1086_v32, %v1085_v54  ;;  %v959_v32 = vld [vmem:[%s1699_s20] sm:$0xff] }
 0x63d   :  { %v677_v48 = vsel %vm431_vm6, %v1584_v47, 0.0 }
 0x63e   :  { %678 = vadd.xlane.f32.xlu0 %v677_v48  ;;  %1255 = vmatpush3.bf16.msra.mxu0 %v1254_v56  ;;  %v1266_v56 = vpack.c.bf16 %v960_v55, %v959_v32 }
 0x63f   :  { %1256 = vmatprep.subr.bf16.mxu0 %v1339_v2 }
 0x642   :  { %1258 = vmatpush3.bf16.msra.mxu0 %v1257_v58 }
 0x643   :  { %1265 = vmatprep.subr.bf16.mxu0 %v1339_v2 }
 0x654   :  { %798 = vrot.lane.b32.xlu0 %v338_v12, %s1343_s2 }
 0x6cb   :  { %v679_v49 = vpop.xlane.xlu0 %678 }
 0x6cc   :  { %v680_v50 = vmul.f32 0.03125, %v679_v49 }
 0x6ce   :  { %v681_v51 = vsub.f32 %v1584_v47, %v680_v50 }
 0x6cf   :  { %v799_v15 = vpop.permute.xlu0 %798 }
 0x6d0   :  { %v682_v52 = vmul.f32 %v681_v51, %v681_v51 }
 0x6d2   :  { %v683_v53 = vsel %vm431_vm6, %v682_v52, 0.0 }
 0x6d3   :  { %684 = vadd.xlane.f32.xlu1 %v683_v53 }
 0x760   :  { %v685_v59 = vpop.xlane.xlu1 %684 }
 0x761   :  { %v686_v60 = vmul.f32 0.03125, %v685_v59 }
 0x763   :  { %v687_v61 = vadd.f32 1e-05, %v686_v60 }
 0x765   :  { %1301 = vrsqrt.f32 %v687_v61 }
 0x76f   :  { %v1302_v62 = vpop.eup %1301 }
 0x770   :  { %v689_v0 = vmul.f32 %v1302_v62, %v681_v51 }
 0x772   :  { %v696_v3 = vmul.f32 %v1082_v63, %v689_v0  ;;  %v1104_v63 = vld [vmem:[%s1697_s18] ss:$0 sm:$0xff]  ;;  %s1315_s18 = scalar_lea.vmem %s1051_s13, 128 }
 0x773   :  { %p1316_p0 = scmp.ne.s32.totalorder %s1051_s13, %s1315_s18  ;;  %p1321_p2 = scmp.lt.s32.totalorder %s1315_s18, %s1315_s18 }
 0x774   :  { %v703_v5 = vadd.f32 %v1083_v1, %v696_v3  ;;  %v1105_v1 = vld [vmem:[%s1698_s19] ss:$0 sm:$0xff] }
 0x775   :  { %p1322_p3 = por %p1321_p2, %p1320_p1 }
 0x776   :  { %v1084_v6 = vmul.f32 -1.442695, %v703_v5 }
 0x777   :  { %p1323_p4 = pnand %p1322_p3, %p1316_p0 }
 0x778   :  { %1303 = vpow2.f32 %v1084_v6 }
 0x782   :  { %v1304_v7 = vpop.eup %1303 }
 0x783   :  { %v707_v8 = vadd.f32 1.0, %v1304_v7  ;;  %v1106_v7 = vld [vmem:[%s1700_s21] ss:$0 sm:$0xff] }
 0x785   :  { %1305 = vrcp.f32 %v707_v8 }
 0x78f   :  { %v1306_v9 = vpop.eup %1305 }
 0x790   :  { %v710_v10 = vmul.f32 %v1306_v9, %v703_v5 }
 0x792   :  { %1204 = vmatmul.mubr.msk.f32.vlgmr.msra.gmra.mrb[4].mxu0 %vm431_vm6, %v710_v10 }
 0x793   :  { %1225 = vmatprep.mubr.msk.f32.mxu0 %vm1340_vm0, %v1341_v4  ;;  %v1097_v4 = vld [vmem:[%s1695_s16 + $0x20] sm:$0xff]  ;;  %1267 = vmatpush3.bf16.msra.mxu0 %v1266_v56 }
 0x794   :  { %v1260_v25 = vpack.c.bf16 %v1098_v23, %v1097_v4  ;;  %1268 = vmatprep.subr.bf16.mxu0 %v1339_v2 }
 0x796   :  { %1261 = vmatpush3.bf16.msra.mxu1 %v1260_v25 }
 0x797   :  { %1262 = vmatprep.subr.bf16.mxu1 %v1339_v2 }
 0x79a   :  { %1264 = vmatpush3.bf16.msra.mxu1 %v1263_v27 }
 0x865   :  { %v793_v12 = vpop.f32.mrb[4].mxu0 }
 0x866   :  { %v794_v13 = vadd.f32 %v1090_v11, %v793_v12  ;;  %v1205_v14 = vpop.f32.mrb[5].mxu0 }
 0x868   :  { %v801_v16 = vadd.f32 %v799_v15, %v794_v13 }
 0x86a   :  { %v806_v17 = vsel %vm431_vm6, %v801_v16, 0.0 }
 0x86b   :  { %807 = vadd.xlane.f32.xlu1 %v806_v17 }
 0x8f8   :  { %v808_v18 = vpop.xlane.xlu1 %807 }
 0x8f9   :  { %v809_v19 = vmul.f32 0.03125, %v808_v18 }
 0x8fb   :  { %v810_v20 = vsub.f32 %v801_v16, %v809_v19 }
 0x8fd   :  { %v811_v21 = vmul.f32 %v810_v20, %v810_v20 }
 0x8ff   :  { %v812_v22 = vsel %vm431_vm6, %v811_v21, 0.0 }
 0x900   :  { %813 = vadd.xlane.f32.xlu1 %v812_v22 }
 0x98d   :  { %v814_v28 = vpop.xlane.xlu1 %813 }
 0x98e   :  { %v815_v29 = vmul.f32 0.03125, %v814_v28 }
 0x990   :  { %v816_v30 = vadd.f32 1e-05, %v815_v29 }
 0x992   :  { %1307 = vrsqrt.f32 %v816_v30 }
 0x99c   :  { %v1308_v31 = vpop.eup %1307 }
 0x99d   :  { %v818_v34 = vmul.f32 %v1308_v31, %v810_v20 }
 0x99f   :  { %v825_v36 = vmul.f32 %v1094_v33, %v818_v34 }
 0x9a1   :  { %v832_v37 = vadd.f32 %v1095_v35, %v825_v36 }
 0x9a3   :  { %v1096_v38 = vmul.f32 -1.442695, %v832_v37 }
 0x9a5   :  { %1309 = vpow2.f32 %v1096_v38 }
 0x9af   :  { %v1310_v39 = vpop.eup %1309 }
 0x9b0   :  { %v836_v40 = vadd.f32 1.0, %v1310_v39 }
 0x9b2   :  { %1311 = vrcp.f32 %v836_v40 }
 0x9bc   :  { %v1312_v41 = vpop.eup %1311 }
 0x9bd   :  { %v839_v42 = vmul.f32 %v1312_v41, %v832_v37 }
 0x9bf   :  { %1215 = vmatmul.mubr.msk.f32.vlgmr.msra.gmra.mrb[8].mxu1 %vm431_vm6, %v839_v42 }
 0xa92   :  { %v922_v44 = vpop.f32.mrb[8].mxu1 }
 0xa93   :  { %v923_v45 = vadd.f32 %v1102_v43, %v922_v44  ;;  %v1216_v46 = vpop.f32.mrb[9].mxu1 }
 0xa95   :  { %v926_v48 = vadd.f32 %v923_v45, %v1584_v47  ;;  %v961_v47 = vld [vmem:[%s1699_s20 + $0x10] sm:$0xff] }
 0xa96   :  { %v1269_v58 = vpack.c.bf16 %v962_v57, %v961_v47 }
 0xa97   :  { %v929_v49 = vsel %vm431_vm6, %v926_v48, 0.0 }
 0xa98   :  { %930 = vadd.xlane.f32.xlu1 %v929_v49  ;;  %1270 = vmatpush3.bf16.msra.mxu0 %v1269_v58 }
 0xb25   :  { %v931_v50 = vpop.xlane.xlu1 %930 }
 0xb26   :  { %v932_v51 = vmul.f32 0.03125, %v931_v50 }
 0xb28   :  { %v933_v52 = vsub.f32 %v926_v48, %v932_v51 }
 0xb2a   :  { %v934_v53 = vmul.f32 %v933_v52, %v933_v52 }
 0xb2c   :  { %v935_v54 = vsel %vm431_vm6, %v934_v53, 0.0 }
 0xb2d   :  { %936 = vadd.xlane.f32.xlu1 %v935_v54 }
 0xbba   :  { %v937_v59 = vpop.xlane.xlu1 %936 }
 0xbbb   :  { %v938_v60 = vmul.f32 0.03125, %v937_v59 }
 0xbbd   :  { %v939_v61 = vadd.f32 1e-05, %v938_v60 }
 0xbbf   :  { %1313 = vrsqrt.f32 %v939_v61 }
 0xbc9   :  { %v1314_v62 = vpop.eup %1313 }
 0xbca   :  { %v941_v0 = vmul.f32 %v1314_v62, %v933_v52 }
 0xbcc   :  { %v948_v3 = vmul.f32 %v1104_v63, %v941_v0 }
 0xbce   :  { %v955_v5 = vadd.f32 %v1105_v1, %v948_v3 }
 0xbd0   :  { %vm956_vm7 = vcmp.ge.f32.partialorder %v955_v5, 0.0  ;;  %v957_v6 = vmul.f32 0.01, %v955_v5 }
 0xbd2   :  { %v958_v2 = vsel %vm956_vm7, %v955_v5, %v957_v6 }
 0xbd3   :  { %1226 = vmatmul.mubr.msk.f32.vlgmr.msra.gmra.mrb[6].mxu0 %vm431_vm6, %v958_v2 }
 0xca6   :  { %v1039_v8 = vpop.f32.mrb[6].mxu0 }
 0xca7   :  { %v1040_v9 = vadd.f32 %v1106_v7, %v1039_v8  ;;  %v1227_v10 = vpop.f32.mrb[7].mxu0 }
 0xca9   :  { %1043 = vst [vmem:[#allocation2] sm:$0xff] %v1040_v9 }
 0xcaa   :  { %1326 = shalt.err (!%p1323_p4)
}
 0xcab   :  { %s1327_s6 = scalar_lea.hbm %s1701_s22, 128 }
 0xcac   :  { %p1328_p5 = scmp.ne.s32.totalorder %s1701_s22, %s1327_s6  ;;  %p1331_p6 = scmp.lt.u32.totalorder %s1327_s6, %s1701_s22 }
 0xcae   :  { %p1333_p7 = pnand %p1331_p6, %p1328_p5 }
 0xcb0   :  { %1336 = shalt.err (!%p1333_p7)
}
 0xcb1   :  { %1053 = dma.vmem_to_hbm [thread:$0]  %s1051_s13, 128, %s1701_s22, [#allocation3]  }
 0xcb2   :  { %1337 = dma.done.wait [#allocation3], 128  }
 0xcb3   :  { %1338 = vsyncadd [#allocation3], 4294967168 }
 0xcb4   :  { %1057 = vsyncpa [#allocation3], 1 }

</bundles_post_ra>
